<compile_context>
chip_gen: v6e
topology: v6e:2x2x1
jax: 0.10.0
libtpu: 0.0.40
codegen_flags: <defaults>
</compile_context>

<pallas_src>
import functools

import jax
import jax.numpy as jnp
from jax import lax
from jax.experimental import pallas as pl
from jax.experimental.pallas import tpu as pltpu

BN_EPS = 1e-5
NCORES = 2                              # explicit megacore split for pass 1 (v7x: 2 TCs)
VMEM_LIMIT_BYTES = 48 * 1024 * 1024     # raised scoped-VMEM limit (v5e default is 16 MiB)
VMEM_BUDGET_BYTES = 28 * 1024 * 1024    # what our own tile set may occupy
# Contract dim 1 of x (tm, K) with dim 1 of w (tn, K) -> (tm, tn): lets us use the
# PyTorch nn.Linear weight layout (out_dim, in_dim) with no transpose copy.
NT_DIMS = (((1,), (1,)), ((), ()))


def _round_up(x, m):
    return (x + m - 1) // m * m


def _ceil_div(a, b):
    return -(-a // b)


def _derive_tiles(n_rows, in_dim, f_pad, isz, *, tm_max=512, tn_max=512):
    """Pick (tm, tn, n_row_tiles, n_pad) so the double-buffered tile set fits VMEM."""
    in_v = _round_up(in_dim, 128)       # lane-padded width for VMEM accounting
    # Feature tile: lane-dense multiple of 128 that divides f_pad and whose
    # (conservatively double-buffered) weight block uses at most half the budget.
    tn = min(f_pad, tn_max)
    while tn > 128 and (f_pad % tn != 0 or 2 * tn * in_v * isz > VMEM_BUDGET_BYTES // 2):
        tn -= 128
    # Row tile from the remaining budget (x tile + y/out tile, double-buffered).
    rem = VMEM_BUDGET_BYTES - 2 * tn * in_v * isz
    per_row = 2 * (in_v + tn) * isz
    tm = max(8, min(tm_max, max(0, rem) // per_row // 8 * 8))
    # Shrink tm so row padding stays below one 8-row quantum per tile while keeping
    # an even tile count for the explicit 2-core split of pass 1.
    tiles = NCORES * max(1, _ceil_div(n_rows, NCORES * tm))
    tm = min(tm, _round_up(_ceil_div(n_rows, tiles), 8))
    return tm, tn, tiles, tiles * tm


# ---------------------------------------------------------------------------
# Pass 1: per-feature sum / sum-of-squares of relu(x @ W^T + b); optionally
# streams y back to HBM (only when pass 2 will not recompute it).
# ---------------------------------------------------------------------------
def _linear_relu_stats_kernel(x_ref, w_ref, b_ref, *out_refs, write_y):
    if write_y:
        y_ref, sum_ref, sq_ref = out_refs
    else:
        sum_ref, sq_ref = out_refs

    @pl.when(pl.program_id(2) == 0)          # fresh (core, feature-tile) accumulator
    def _():
        sum_ref[...] = jnp.zeros_like(sum_ref)
        sq_ref[...] = jnp.zeros_like(sq_ref)

    y = lax.dot_general(x_ref[...], w_ref[...], NT_DIMS,
                        preferred_element_type=jnp.float32)
    y = jnp.maximum(y + b_ref[...], 0.0)

    # Padded rows are all-zero in x, so they contribute exactly relu(bias); that is
    # removed analytically in the wrapper -> no per-row iota/compare/select here.
    sum_ref[...] += jnp.sum(y, axis=0, keepdims=True)[None]
    sq_ref[...] += jnp.sum(y * y, axis=0, keepdims=True)[None]

    if write_y:
        y_ref[...] = y.astype(y_ref.dtype)


# ---------------------------------------------------------------------------
# Pass 2a (recompute): fused linear + bias + ReLU + folded BatchNorm affine.
# ---------------------------------------------------------------------------
def _fused_linear_relu_affine_kernel(x_ref, w_ref, b_ref, scale_ref, shift_ref, o_ref):
    y = lax.dot_general(x_ref[...], w_ref[...], NT_DIMS,
                        preferred_element_type=jnp.float32)
    y = jnp.maximum(y + b_ref[...], 0.0)
    o_ref[...] = (y * scale_ref[...] + shift_ref[...]).astype(o_ref.dtype)


# ---------------------------------------------------------------------------
# Pass 2b (streamed y): per-feature scale & shift only.
# ---------------------------------------------------------------------------
def _affine_kernel(y_ref, scale_ref, shift_ref, o_ref):
    y = y_ref[...].astype(jnp.float32)
    o_ref[...] = (y * scale_ref[...] + shift_ref[...]).astype(o_ref.dtype)


def dense_relu_forward(x, w, b, gamma, beta):
    """Linear(in_dim, out_dim) -> ReLU -> BatchNorm1d (training-mode batch stats).

    x: (..., in_dim); w: (out_dim, in_dim) (PyTorch nn.Linear layout);
    b / gamma / beta: (out_dim,).
    """
    orig_shape = x.shape
    in_dim = orig_shape[-1]
    out_dim = w.shape[0]
    dt = x.dtype
    isz = jnp.dtype(dt).itemsize

    x2d = x.reshape(-1, in_dim)             # BN statistics run over all N = prod(batch) rows
    n_rows = x2d.shape[0]

    f_pad = _round_up(out_dim, 128)         # lane-dense feature axis -> unmasked stores
    tm, tn, n_tiles, n_pad = _derive_tiles(n_rows, in_dim, f_pad, isz)
    f_tiles = f_pad // tn
    rpc = n_tiles // NCORES                 # row tiles per core (pass-1 megacore split)

    # Recompute y in pass 2 when re-reading x (+resident W) is cheaper than a
    # round-trip of the (N, f_pad) intermediate through HBM.
    recompute = in_dim <= f_pad

    # Pad only when actually required (avoid wrapper-side full copies).
    x_p = x2d if n_pad == n_rows else jnp.zeros((n_pad, in_dim), dt).at[:n_rows].set(x2d)
    w_c = w.astype(dt)                      # keep PyTorch layout; no transpose materialized
    w_p = w_c if f_pad == out_dim else jnp.zeros((f_pad, in_dim), dt).at[:out_dim].set(w_c)
    b_p = jnp.zeros((1, f_pad), jnp.float32).at[0, :out_dim].set(b.astype(jnp.float32))
    g_p = jnp.zeros((f_pad,), jnp.float32).at[:out_dim].set(gamma.astype(jnp.float32))
    be_p = jnp.zeros((f_pad,), jnp.float32).at[:out_dim].set(beta.astype(jnp.float32))

    # ------------------- pass 1: batch statistics (+ optional y) -------------------
    in_specs1 = [
        pl.BlockSpec((tm, in_dim), lambda c, f, r: (c * rpc + r, 0)),   # x rows (streamed)
        pl.BlockSpec((tn, in_dim), lambda c, f, r: (f, 0)),             # W tile (resident / f)
        pl.BlockSpec((1, tn), lambda c, f, r: (0, f)),                  # bias tile
    ]
    stats_spec = pl.BlockSpec((1, 1, tn), lambda c, f, r: (c, 0, f))    # per-core accumulator
    stats_shape = jax.ShapeDtypeStruct((NCORES, 1, f_pad), jnp.float32)
    if recompute:
        out_shape1 = (stats_shape, stats_shape)
        out_specs1 = (stats_spec, stats_spec)
    else:
        out_shape1 = (jax.ShapeDtypeStruct((n_pad, f_pad), dt), stats_shape, stats_shape)
        out_specs1 = (pl.BlockSpec((tm, tn), lambda c, f, r: (c * rpc + r, f)),
                      stats_spec, stats_spec)

    flops1 = 2 * n_pad * in_dim * f_pad + 4 * n_pad * f_pad
    bytes1 = (f_tiles * n_pad * in_dim + NCORES * f_pad * in_dim) * isz + 8 * NCORES * f_pad
    if not recompute:
        bytes1 += n_pad * f_pad * isz

    res1 = pl.pallas_call(
        functools.partial(_linear_relu_stats_kernel, write_y=not recompute),
        out_shape=out_shape1,
        grid_spec=pltpu.PrefetchScalarGridSpec(
            num_scalar_prefetch=0,
            grid=(NCORES, f_tiles, rpc),            # row (reduction) axis innermost
            in_specs=in_specs1,
            out_specs=out_specs1,
        ),
        compiler_params=pltpu.CompilerParams(
            dimension_semantics=("parallel", "arbitrary", "arbitrary"),
            vmem_limit_bytes=VMEM_LIMIT_BYTES),
        cost_estimate=pl.CostEstimate(flops=flops1, transcendentals=0,
                                      bytes_accessed=bytes1),
    )(x_p, w_p, b_p)

    if recompute:
        y_pad = None
        sum_p, sq_p = res1
    else:
        y_pad, sum_p, sq_p = res1

    # ---- fold BN into a per-feature scale & shift (tiny f_pad-length glue) ----
    pad_rows = float(n_pad - n_rows)
    rb = jnp.maximum(b_p[0], 0.0)               # padded (all-zero) x rows yield relu(bias)
    s1 = jnp.sum(sum_p, axis=(0, 1)) - pad_rows * rb
    s2 = jnp.sum(sq_p, axis=(0, 1)) - pad_rows * rb * rb
    inv_n = 1.0 / float(n_rows)
    mean = s1 * inv_n
    var = jnp.maximum(s2 * inv_n - mean * mean, 0.0)   # biased variance, f32
    scale = g_p * lax.rsqrt(var + BN_EPS)
    shift = be_p - mean * scale
    scale2d = scale.reshape(1, f_pad)
    shift2d = shift.reshape(1, f_pad)

    # ------------------- pass 2: normalized output -------------------
    out_shape2 = jax.ShapeDtypeStruct((n_pad, f_pad), dt)
    out_spec2 = pl.BlockSpec((tm, tn), lambda f, r: (r, f))
    params2 = pltpu.CompilerParams(
        dimension_semantics=("parallel", "parallel"),   # sharded across TCs on v7x
        vmem_limit_bytes=VMEM_LIMIT_BYTES)

    if recompute:
        out_pad = pl.pallas_call(
            _fused_linear_relu_affine_kernel,
            out_shape=out_shape2,
            grid_spec=pltpu.PrefetchScalarGridSpec(
                num_scalar_prefetch=0,
                grid=(f_tiles, n_tiles),
                in_specs=[
                    pl.BlockSpec((tm, in_dim), lambda f, r: (r, 0)),
                    pl.BlockSpec((tn, in_dim), lambda f, r: (f, 0)),
                    pl.BlockSpec((1, tn), lambda f, r: (0, f)),
                    pl.BlockSpec((1, tn), lambda f, r: (0, f)),
                    pl.BlockSpec((1, tn), lambda f, r: (0, f)),
                ],
                out_specs=out_spec2,
            ),
            compiler_params=params2,
            cost_estimate=pl.CostEstimate(
                flops=2 * n_pad * in_dim * f_pad + 3 * n_pad * f_pad,
                transcendentals=0,
                bytes_accessed=(f_tiles * n_pad * in_dim + f_pad * in_dim
                                + n_pad * f_pad) * isz),
        )(x_p, w_p, b_p, scale2d, shift2d)
    else:
        out_pad = pl.pallas_call(
            _affine_kernel,
            out_shape=out_shape2,
            grid_spec=pltpu.PrefetchScalarGridSpec(
                num_scalar_prefetch=0,
                grid=(f_tiles, n_tiles),
                in_specs=[
                    pl.BlockSpec((tm, tn), lambda f, r: (r, f)),
                    pl.BlockSpec((1, tn), lambda f, r: (0, f)),
                    pl.BlockSpec((1, tn), lambda f, r: (0, f)),
                ],
                out_specs=out_spec2,
            ),
            compiler_params=params2,
            input_output_aliases={0: 0},      # reuse y_pad's HBM buffer for the output
            cost_estimate=pl.CostEstimate(
                flops=2 * n_pad * f_pad, transcendentals=0,
                bytes_accessed=2 * n_pad * f_pad * isz),
        )(y_pad, scale2d, shift2d)

    out = out_pad[:n_rows, :out_dim]
    return out.reshape(orig_shape[:-1] + (out_dim,))


def _reference(x, w, b, gamma, beta):
    """Pure-JAX reference mirroring the PyTorch forward (training-mode BN)."""
    y = jnp.einsum("...i,oi->...o", x, w, precision=lax.Precision.HIGHEST) + b
    y = jnp.maximum(y, 0.0)
    y2d = y.reshape(-1, y.shape[-1])
    mean = jnp.mean(y2d, axis=0)
    var = jnp.mean((y2d - mean) ** 2, axis=0)
    out = (y2d - mean) / jnp.sqrt(var + BN_EPS) * gamma + beta
    return out.reshape(y.shape)


def _make_params(key, in_dim, out_dim):
    kw, kb, kg, kbe = jax.random.split(key, 4)
    bound = 1.0 / jnp.sqrt(jnp.float32(in_dim))
    w = jax.random.uniform(kw, (out_dim, in_dim), jnp.float32, -bound, bound)
    b = jax.random.uniform(kb, (out_dim,), jnp.float32, -bound, bound)
    gamma = 1.0 + 0.1 * jax.random.normal(kg, (out_dim,), jnp.float32)
    beta = 0.1 * jax.random.normal(kbe, (out_dim,), jnp.float32)
    return w, b, gamma, beta


if __name__ == "__main__":
    key = jax.random.PRNGKey(0)
    k1, k2, kx1, kx2 = jax.random.split(key, 4)

    # Case 1: 3-D input (B, T, C) -> recompute path (in_dim <= f_pad), with row padding.
    B, T, in_dim, out_dim = 2, 9, 32, 32
    x1 = jax.random.normal(kx1, (B, T, in_dim), jnp.float32)
    w1, b1, g1, be1 = _make_params(k1, in_dim, out_dim)
    out1 = jax.block_until_ready(dense_relu_forward(x1, w1, b1, g1, be1))
    ref1 = _reference(x1, w1, b1, g1, be1)
    assert out1.shape == (B, T, out_dim), out1.shape
    err1 = float(jnp.max(jnp.abs(out1 - ref1)))
    assert jnp.allclose(out1, ref1, atol=2e-3, rtol=2e-3), f"case1 max abs err {err1}"

    # Case 2: 2-D input with in_dim > f_pad -> streamed-y path (other kernel pair).
    in_dim2, out_dim2, rows2 = 160, 64, 6
    x2 = jax.random.normal(kx2, (rows2, in_dim2), jnp.float32)
    w2, b2, g2, be2 = _make_params(k2, in_dim2, out_dim2)
    out2 = jax.block_until_ready(dense_relu_forward(x2, w2, b2, g2, be2))
    ref2 = _reference(x2, w2, b2, g2, be2)
    assert out2.shape == (rows2, out_dim2), out2.shape
    err2 = float(jnp.max(jnp.abs(out2 - ref2)))
    assert jnp.allclose(out2, ref2, atol=2e-3, rtol=2e-3), f"case2 max abs err {err2}"

    print("KERNEL_OK")
</pallas_src>

<mosaic_0001>
module attributes {stable_mosaic.version = 11 : i64} {
  func.func @_linear_relu_stats_kernel(%arg0: i32, %arg1: i32, %arg2: i32, %arg3: memref<16x32xf32, #tpu.memory_space<vmem>>, %arg4: memref<128x32xf32, #tpu.memory_space<vmem>>, %arg5: memref<1x128xf32, #tpu.memory_space<vmem>>, %arg6: memref<1x1x128xf32, #tpu.memory_space<vmem>>, %arg7: memref<1x1x128xf32, #tpu.memory_space<vmem>>) attributes {dimension_semantics = [#tpu.dimension_semantics<parallel>, #tpu.dimension_semantics<arbitrary>, #tpu.dimension_semantics<arbitrary>], iteration_bounds = array<i64: 2, 1, 1>, scalar_prefetch = 0 : i64, scratch_operands = 0 : i64, tpu.core_type = #tpu.core_type<tc>, window_params = [{transform_indices = @transform_0, window_bounds = array<i64: 16, 32>}, {transform_indices = @transform_1, window_bounds = array<i64: 128, 32>}, {transform_indices = @transform_2, window_bounds = array<i64: 1, 128>}, {transform_indices = @transform_3, window_bounds = array<i64: 1, 1, 128>}, {transform_indices = @transform_4, window_bounds = array<i64: 1, 1, 128>}]} {
    %c0_i32 = arith.constant 0 : i32
    %0 = arith.cmpi eq, %arg2, %c0_i32 : i32
    %1 = arith.extui %0 : i1 to i32
    %c0_i32_0 = arith.constant 0 : i32
    %2 = arith.cmpi ne, %1, %c0_i32_0 : i32
    scf.if %2 {
      %cst_21 = arith.constant 0.000000e+00 : f32
      %24 = vector.broadcast %cst_21 : f32 to vector<1x1x128xf32>
      %c0_22 = arith.constant 0 : index
      %c0_23 = arith.constant 0 : index
      %c0_24 = arith.constant 0 : index
      %25 = vector.load %arg6[%c0_22, %c0_23, %c0_24] : memref<1x1x128xf32, #tpu.memory_space<vmem>>, vector<1x1x128xf32>
      tpu.vector_store %arg6[%c0_22, %c0_23, %c0_24], %24 {strides = array<i32>} : memref<1x1x128xf32, #tpu.memory_space<vmem>>, vector<1x1x128xf32>,
      %cst_25 = arith.constant 0.000000e+00 : f32
      %26 = vector.broadcast %cst_25 : f32 to vector<1x1x128xf32>
      %c0_26 = arith.constant 0 : index
      %c0_27 = arith.constant 0 : index
      %c0_28 = arith.constant 0 : index
      %27 = vector.load %arg7[%c0_26, %c0_27, %c0_28] : memref<1x1x128xf32, #tpu.memory_space<vmem>>, vector<1x1x128xf32>
      tpu.vector_store %arg7[%c0_26, %c0_27, %c0_28], %26 {strides = array<i32>} : memref<1x1x128xf32, #tpu.memory_space<vmem>>, vector<1x1x128xf32>,
    } else {
    }
    %c0 = arith.constant 0 : index
    %c0_1 = arith.constant 0 : index
    %3 = vector.load %arg3[%c0, %c0_1] : memref<16x32xf32, #tpu.memory_space<vmem>>, vector<16x32xf32>
    %c0_2 = arith.constant 0 : index
    %c0_3 = arith.constant 0 : index
    %4 = vector.load %arg4[%c0_2, %c0_3] : memref<128x32xf32, #tpu.memory_space<vmem>>, vector<128x32xf32>
    %cst = arith.constant dense<0.000000e+00> : vector<16x128xf32>
    %5 = tpu.matmul %3, %4, %cst {dimension_numbers = #tpu.dot_dimension_numbers<[1], [1], [0], [0], [0, 0, 1, 0], [], []>} : vector<16x32xf32>, vector<128x32xf32>, vector<16x128xf32> -> vector<16x128xf32>
    %c0_4 = arith.constant 0 : index
    %c0_5 = arith.constant 0 : index
    %6 = vector.load %arg5[%c0_4, %c0_5] : memref<1x128xf32, #tpu.memory_space<vmem>>, vector<1x128xf32>
    %7 = vector.broadcast %6 : vector<1x128xf32> to vector<16x128xf32>
    %8 = arith.addf %5, %7 : vector<16x128xf32>
    %cst_6 = arith.constant 0.000000e+00 : f32
    %9 = vector.broadcast %cst_6 : f32 to vector<16x128xf32>
    %10 = arith.maximumf %8, %9 : vector<16x128xf32>
    %c0_7 = arith.constant 0 : index
    %c0_8 = arith.constant 0 : index
    %c0_9 = arith.constant 0 : index
    %11 = vector.load %arg6[%c0_7, %c0_8, %c0_9] : memref<1x1x128xf32, #tpu.memory_space<vmem>>, vector<1x1x128xf32>
    %cst_10 = arith.constant dense<0.000000e+00> : vector<128xf32>
    %12 = vector.multi_reduction <add>, %10, %cst_10 [0] : vector<16x128xf32> to vector<128xf32>
    %13 = vector.shape_cast %12 : vector<128xf32> to vector<1x128xf32>
    %14 = vector.shape_cast %13 : vector<1x128xf32> to vector<1x1x128xf32>
    %15 = arith.addf %11, %14 : vector<1x1x128xf32>
    %c0_11 = arith.constant 0 : index
    %c0_12 = arith.constant 0 : index
    %c0_13 = arith.constant 0 : index
    %16 = vector.load %arg6[%c0_11, %c0_12, %c0_13] : memref<1x1x128xf32, #tpu.memory_space<vmem>>, vector<1x1x128xf32>
    tpu.vector_store %arg6[%c0_11, %c0_12, %c0_13], %15 {strides = array<i32>} : memref<1x1x128xf32, #tpu.memory_space<vmem>>, vector<1x1x128xf32>,
    %c0_14 = arith.constant 0 : index
    %c0_15 = arith.constant 0 : index
    %c0_16 = arith.constant 0 : index
    %17 = vector.load %arg7[%c0_14, %c0_15, %c0_16] : memref<1x1x128xf32, #tpu.memory_space<vmem>>, vector<1x1x128xf32>
    %18 = arith.mulf %10, %10 : vector<16x128xf32>
    %cst_17 = arith.constant dense<0.000000e+00> : vector<128xf32>
    %19 = vector.multi_reduction <add>, %18, %cst_17 [0] : vector<16x128xf32> to vector<128xf32>
    %20 = vector.shape_cast %19 : vector<128xf32> to vector<1x128xf32>
    %21 = vector.shape_cast %20 : vector<1x128xf32> to vector<1x1x128xf32>
    %22 = arith.addf %17, %21 : vector<1x1x128xf32>
    %c0_18 = arith.constant 0 : index
    %c0_19 = arith.constant 0 : index
    %c0_20 = arith.constant 0 : index
    %23 = vector.load %arg7[%c0_18, %c0_19, %c0_20] : memref<1x1x128xf32, #tpu.memory_space<vmem>>, vector<1x1x128xf32>
    tpu.vector_store %arg7[%c0_18, %c0_19, %c0_20], %22 {strides = array<i32>} : memref<1x1x128xf32, #tpu.memory_space<vmem>>, vector<1x1x128xf32>,
    return
  }
  func.func @transform_0(%arg0: i32, %arg1: i32, %arg2: i32) -> (i32, i32) {
    %c1_i32 = arith.constant 1 : i32
    %0 = arith.muli %arg0, %c1_i32 : i32
    %1 = arith.addi %0, %arg2 : i32
    %c0_i32 = arith.constant 0 : i32
    %c0_i32_0 = arith.constant 0 : i32
    return %1, %c0_i32 : i32, i32
  }
  func.func @transform_1(%arg0: i32, %arg1: i32, %arg2: i32) -> (i32, i32) {
    %c0_i32 = arith.constant 0 : i32
    %c0_i32_0 = arith.constant 0 : i32
    return %arg1, %c0_i32 : i32, i32
  }
  func.func @transform_2(%arg0: i32, %arg1: i32, %arg2: i32) -> (i32, i32) {
    %c0_i32 = arith.constant 0 : i32
    %c0_i32_0 = arith.constant 0 : i32
    return %c0_i32, %arg1 : i32, i32
  }
  func.func @transform_3(%arg0: i32, %arg1: i32, %arg2: i32) -> (i32, i32, i32) {
    %c0_i32 = arith.constant 0 : i32
    %c0_i32_0 = arith.constant 0 : i32
    return %arg0, %c0_i32, %arg1 : i32, i32, i32
  }
  func.func @transform_4(%arg0: i32, %arg1: i32, %arg2: i32) -> (i32, i32, i32) {
    %c0_i32 = arith.constant 0 : i32
    %c0_i32_0 = arith.constant 0 : i32
    return %arg0, %c0_i32, %arg1 : i32, i32, i32
  }
}

</mosaic_0001>

<bundles_post_ra>
// kernel: tpu_custom_call.1
= control target key start
LH: loop header
LB: loop body
LE: loop exit
PB: predicated region body
PF: predicated region fallthrough
CT: control target
= control target key end

     0   :  { %10 = vsyncpa [#allocation3], 0  ;;  %s1139_s0 = inlined_call_operand.vmem [shape: f32[32,32], index: 0, kind: input, shape index: {}]   ;;  %s1140_s1 = inlined_call_operand.vmem [shape: f32[128,32], index: 1, kind: input, shape index: {}]   ;;  %s1141_s2 = inlined_call_operand.vmem [shape: f32[1,128], index: 2, kind: input, shape index: {}]   ;;  %s1142_s3 = inlined_call_operand.hbm [shape: f32[2,1,128], index: 3, kind: output, shape index: {0}]   ;;  %s1143_s4 = inlined_call_operand.hbm [shape: f32[2,1,128], index: 4, kind: output, shape index: {1}]  }
   0x1   :  { %12 = vsyncpa [#allocation3 + $0x1], 0 }
   0x2   :  { %13 = vsyncpa [#allocation5], 0 }
   0x3   :  { %15 = vsyncpa [#allocation5 + $0x1], 0  ;;  %s895_s15 = smov 0   ;;  %s897_s16 = smov 0  }
   0x4   :  { %s899_s17 = smov 0   ;;  %s901_s18 = smov 0  }
   0x5   :  { %s903_s19 = smov 0   ;;  %s905_s20 = smov 0  }
   0x6 LB: > { %s613_s21 = sadd.s32 4294967295, %s865_s20   ;;  %s614_s22 = sadd.s32 4294967294, %s865_s20   ;;  %s865_s20 = sphi %s905_s20, %s21_s20   ;;  %s861_s19 = sphi %s903_s19, %s1150_s19   ;;  %s857_s18 = sphi %s901_s18, %s1149_s18   ;;  %s853_s17 = sphi %s899_s17, %s1148_s17   ;;  %s849_s16 = sphi %s897_s16, %s1147_s16   ;;  %s845_s15 = sphi %s895_s15, %s1146_s15  }
   0x7   : > { %s40_s23 = sadd.s32 1, %s861_s19  ;;  %s129_s24 = sadd.s32 1, %s853_s17 }
   0x8   : > { %p42_p0 = scmp.ge.s32.totalorder %s40_s23, 2  ;;  %p139_p1 = scmp.ne.s32.totalorder %s853_s17, %s849_s16 }
   0x9   : > { %p140_p2 = scmp.eq.s32.totalorder %s613_s21, 1  ;;  %p145_p3 = scmp.ne.s32.totalorder %s849_s16, %s845_s15 }
   0xa   : > { %s1152_s23 = smov (%p42_p0, %s40_s23), 0  ;;  %p146_p5 = scmp.eq.s32.totalorder %s614_s22, 1 }
   0xb   : > { %p935_p4 = por %p140_p2, %p139_p1  ;;  %s124_s26 = ssub.s32 %s861_s19, %s1152_s23 }
   0xc   : > { %p619_p6 = scmp.ge.s32.totalorder %s865_s20, 1  ;;  %p127_p7 = scmp.eq.s32.totalorder %s124_s26, 0 }
   0xd   : > { %p942_p8 = por %p146_p5, %p145_p3  ;;  %p218_p9 = scmp.lt.s32.totalorder %s865_s20, 3 }
   0xe   : > { %s948_s28 = scalar_select %p127_p7, %s853_s17, %s129_s24  }
   0xf   : > { %p219_p10 = pnand %p619_p6, %p218_p9 }
  0x10   : > { %s620_s7 = sshll.u32 (!%p219_p10), %s857_s18, 1  ;;  %s1041_s9 = sand.u32 (!%p219_p10), 1, %s849_s16  }
  0x11   : > { %222 = sbr.rel (%p219_p10) target bundleno = 337 (0x151), region = 32  ;;  %p258_p11 = scmp.lt.s32.totalorder (!%p219_p10), %s620_s7, 3 }
  0x12   : > { %s1048_s11 = scalar_lea.vmem (!%p219_p10), [#allocation4], %s1041_s9  ;;  %s459_s6 = scalar_lea.sflag (!%p219_p10), [#allocation3], %s1041_s9 }
  0x13   : > { %s490_s22 = sshll.u32 (!%p219_p10), %s1048_s11, 4  ;;  %s868_s8 = smov (!%p219_p10), [#allocation2]   ;;  %s1072_s22 = int_to_ptr.vmem [resolvable:$true] %s490_s22 }
  0x14   : > { %s763_s12 = sshll.u32 (!%p219_p10), %s868_s8, 4  ;;  %s764_s12 = int_to_ptr.vmem [resolvable:$false] %s763_s12 }
  0x15   : > { %s765_s14 = scalar_lea.vmem (!%p219_p10), %s764_s12, 32 }
  0x16   : > { %v296_v0 = vld [vmem:[%s1140_s1 + $0x78] sm:$0xff]  ;;  %vm304_vm0 = vcmask 261120   ;;  %v295_v1 = vld [vmem:[%s1140_s1 + $0x70] sm:$0xff]  ;;  %s1154_s7 = smov (!%p258_p11, %s620_s7), 3  ;;  %v294_v2 = vld [vmem:[%s1140_s1 + $0x68] sm:$0xff]  ;;  %v867_v18 = vmov 0.0  }
  0x17   : > { %663 = vmatprep.subr.msk.mxu0 %vm304_vm0, %v296_v0  ;;  %s621_s10 = sshll.u32 %s1154_s7, 3  ;;  %v293_v4 = vld [vmem:[%s1140_s1 + $0x60] sm:$0xff]  ;;  %v292_v5 = vld [vmem:[%s1140_s1 + $0x58] sm:$0xff]  ;;  %v291_v6 = vld [vmem:[%s1140_s1 + $0x50] sm:$0xff]  ;;  %278 = vst [vmem:[%s1048_s11] sm:$0x1] %v867_v18 }
  0x18   : > { %664 = vmatpush3.xpose.msk.msra.mxu0 %vm304_vm0, %v296_v0  ;;  %s967_s13 = scalar_lea.vmem %s1139_s0, %s621_s10  ;;  %v290_v7 = vld [vmem:[%s1140_s1 + $0x48] sm:$0xff]  ;;  %v289_v8 = vld [vmem:[%s1140_s1 + $0x40] sm:$0xff]  ;;  %v288_v9 = vld [vmem:[%s1140_s1 + $0x38] sm:$0xff]  ;;  %s1044_s10 = scalar_lea.vmem [#allocation2], %s1041_s9 }
  0x19   : > { %665 = vmatprep.subr.msk.mxu0 %vm304_vm0, %v295_v1  ;;  %v279_v3 = vld [vmem:[%s967_s13] sm:$0xff]  ;;  %v287_v10 = vld [vmem:[%s1140_s1 + $0x30] sm:$0xff]  ;;  %v286_v11 = vld [vmem:[%s1140_s1 + $0x28] sm:$0xff]  ;;  %277 = vst [vmem:[%s1044_s10] sm:$0x1] %v867_v18  ;;  %s476_s21 = sshll.u32 %s1044_s10, 4  ;;  %s1064_s21 = int_to_ptr.vmem [resolvable:$true] %s476_s21 }
  0x1a   : > { %695 = vmatprep.mubr.msk.f32.mxu0 %vm304_vm0, %v279_v3  ;;  %v285_v12 = vld [vmem:[%s1140_s1 + $0x20] sm:$0xff]  ;;  %v284_v13 = vld [vmem:[%s1140_s1 + $0x18] sm:$0xff]  ;;  %v283_v14 = vld [vmem:[%s1140_s1 + $0x10] sm:$0xff]  ;;  %s759_s7 = scalar_lea.vmem %s1064_s21, 16  ;;  %p766_p1 = scmp.lt.s32.totalorder %s1064_s21, %s764_s12 }
  0x1b   : > { %v282_v15 = vld [vmem:[%s1140_s1 + $0x8] sm:$0xff]  ;;  %v281_v16 = vld [vmem:[%s1140_s1] sm:$0xff]  ;;  %p760_p12 = scmp.ne.s32.totalorder %s1064_s21, %s759_s7  ;;  %p767_p2 = scmp.lt.s32.totalorder %s765_s14, %s759_s7 }
  0x1c   : > { %666 = vmatpush3.xpose.msk.msra.mxu0 %vm304_vm0, %v295_v1  ;;  %v280_v17 = vld [vmem:[%s967_s13 + $0x8] sm:$0xff]  ;;  %v622_v19 = vld [vmem:[%s1141_s2] ss:$0 sm:$0xff]  ;;  %s641_s13 = sshll.u32 %s857_s18, 4 }
  0x1d   : > { %667 = vmatprep.subr.msk.mxu0 %vm304_vm0, %v294_v2  ;;  %s1062_s29 = scalar_lea.hbm %s1142_s3, %s641_s13  ;;  %s1070_s5 = scalar_lea.hbm %s1143_s4, %s641_s13 }
  0x1e   : > { %v446_v42 = vld [vmem:[%s1048_s11] sm:$0x1]  ;;  %p761_p13 = pnand %p760_p12, %p935_p4  ;;  %p768_p3 = por %p767_p2, %p766_p1 }
  0x20   : > { %668 = vmatpush3.xpose.msk.msra.mxu0 %vm304_vm0, %v294_v2  ;;  %v436_v39 = vld [vmem:[%s1044_s10] sm:$0x1]  ;;  %p762_p0 = pneg %p761_p13 }
  0x21   : > { %669 = vmatprep.subr.msk.mxu0 %vm304_vm0, %v293_v4 }
  0x22   : > { %p769_p5 = pnand %p768_p3, %p762_p0 }
  0x24   : > { %670 = vmatpush3.xpose.msk.msra.mxu0 %vm304_vm0, %v293_v4 }
  0x25   : > { %671 = vmatprep.subr.msk.mxu0 %vm304_vm0, %v292_v5 }
  0x28   : > { %672 = vmatpush3.xpose.msk.msra.mxu0 %vm304_vm0, %v292_v5 }
  0x29   : > { %673 = vmatprep.subr.msk.mxu0 %vm304_vm0, %v291_v6 }
  0x2c   : > { %674 = vmatpush3.xpose.msk.msra.mxu0 %vm304_vm0, %v291_v6 }
  0x2d   : > { %675 = vmatprep.subr.msk.mxu0 %vm304_vm0, %v290_v7 }
  0x30   : > { %676 = vmatpush3.xpose.msk.msra.mxu0 %vm304_vm0, %v290_v7 }
  0x31   : > { %677 = vmatprep.subr.msk.mxu0 %vm304_vm0, %v289_v8 }
  0x34   : > { %678 = vmatpush3.xpose.msk.msra.mxu0 %vm304_vm0, %v289_v8 }
  0x35   : > { %679 = vmatprep.subr.msk.mxu0 %vm304_vm0, %v288_v9 }
  0x38   : > { %680 = vmatpush3.xpose.msk.msra.mxu0 %vm304_vm0, %v288_v9 }
  0x39   : > { %681 = vmatprep.subr.msk.mxu0 %vm304_vm0, %v287_v10 }
  0x3c   : > { %682 = vmatpush3.xpose.msk.msra.mxu0 %vm304_vm0, %v287_v10 }
  0x3d   : > { %683 = vmatprep.subr.msk.mxu0 %vm304_vm0, %v286_v11 }
  0x40   : > { %684 = vmatpush3.xpose.msk.msra.mxu0 %vm304_vm0, %v286_v11 }
  0x41   : > { %685 = vmatprep.subr.msk.mxu0 %vm304_vm0, %v285_v12 }
  0x44   : > { %686 = vmatpush3.xpose.msk.msra.mxu0 %vm304_vm0, %v285_v12 }
  0x45   : > { %687 = vmatprep.subr.msk.mxu0 %vm304_vm0, %v284_v13 }
  0x48   : > { %688 = vmatpush3.xpose.msk.msra.mxu0 %vm304_vm0, %v284_v13 }
  0x49   : > { %689 = vmatprep.subr.msk.mxu0 %vm304_vm0, %v283_v14 }
  0x4c   : > { %690 = vmatpush3.xpose.msk.msra.mxu0 %vm304_vm0, %v283_v14 }
  0x4d   : > { %691 = vmatprep.subr.msk.mxu0 %vm304_vm0, %v282_v15 }
  0x50   : > { %692 = vmatpush3.xpose.msk.msra.mxu0 %vm304_vm0, %v282_v15 }
  0x51   : > { %693 = vmatprep.subr.msk.mxu0 %vm304_vm0, %v281_v16 }
  0x54   : > { %694 = vmatpush3.xpose.msk.msra.mxu0 %vm304_vm0, %v281_v16 }
  0x57   : > { %696 = vmatmul.mubr.msk.f32.vlgmr.msra.gmra.mxu0 %vm304_vm0, %v280_v17 }
 0x117   : > { %v697_v20 = vpop.f32.mrf.mxu0 }
 0x118   : > { %v431_v21 = vadd.f32 %v697_v20, %v622_v19 }
 0x119   : > { %v425_v22 = vpop.f32.mrf.mxu0 }
 0x11a   : > { %v435_v23 = vmax.f32 %v431_v21, 0.0  ;;  %v426_v24 = vadd.f32 %v622_v19, %v425_v22 }
 0x11c   : > { %v434_v25 = vmax.f32 %v426_v24, 0.0  ;;  %v448_v26 = vmul.f32 %v435_v23, %v435_v23 }
 0x11e   : > { %v437_v27 = vadd.f32 %v435_v23, %v434_v25  ;;  %v447_v28 = vmul.f32 %v434_v25, %v434_v25 }
 0x120   : > { %v438_v29 = vrot.slane %v437_v27, 4  ;;  %v449_v30 = vadd.f32 %v448_v26, %v447_v28 }
 0x122   : > { %v439_v31 = vadd.f32 %v438_v29, %v437_v27  ;;  %v450_v32 = vrot.slane %v449_v30, 4 }
 0x124   : > { %v440_v33 = vrot.slane %v439_v31, 2  ;;  %v451_v34 = vadd.f32 %v450_v32, %v449_v30 }
 0x126   : > { %v441_v35 = vadd.f32 %v440_v33, %v439_v31  ;;  %v452_v36 = vrot.slane %v451_v34, 2 }
 0x128   : > { %v442_v37 = vrot.slane %v441_v35, 1  ;;  %v453_v38 = vadd.f32 %v452_v36, %v451_v34 }
 0x12a   : > { %v443_v40 = vadd.f32 %v442_v37, %v441_v35  ;;  %v454_v41 = vrot.slane %v453_v38, 1 }
 0x12c   : > { %v444_v43 = vadd.f32 %v443_v40, %v436_v39  ;;  %v455_v44 = vadd.f32 %v454_v41, %v453_v38 }
 0x12e   : > { %445 = vst [vmem:[%s1044_s10] sm:$0x1] %v444_v43  ;;  %v456_v45 = vadd.f32 %v455_v44, %v446_v42 }
 0x12f   : > { %772 = shalt.err (!%p769_p5)
}
 0x130   : > { %s773_s10 = scalar_lea.hbm %s1062_s29, 16  ;;  %s777_s26 = scalar_lea.hbm %s1142_s3, 32 }
 0x131   : > { %p774_p6 = scmp.ne.s32.totalorder %s1062_s29, %s773_s10  ;;  %p778_p10 = scmp.lt.s32.totalorder %s1062_s29, %s1142_s3 }
 0x132   : > { %p779_p11 = scmp.lt.s32.totalorder %s777_s26, %s773_s10 }
 0x133   : > { %p775_p7 = pnand %p774_p6, %p935_p4 }
 0x134   : > { %p780_p12 = por %p779_p11, %p778_p10 }
 0x135   : > { %p776_p9 = pneg %p775_p7 }
 0x137   : > { %p781_p13 = pnand %p780_p12, %p776_p9 }
 0x139   : > { %784 = shalt.err (!%p781_p13)
}
 0x13a   : > { %698 = dma.vmem_to_hbm [thread:$0]  (%p935_p4), %s1064_s21, 16, %s1062_s29, %s459_s6   ;;  %457 = vst [vmem:[%s1048_s11] sm:$0x1] %v456_v45 }
 0x13b   : > { %s463_s7 = scalar_lea.sflag [#allocation5], %s1041_s9  ;;  %s785_s8 = scalar_lea.vmem %s1072_s22, 16 }
 0x13c   : > { %p786_p0 = scmp.ne.s32.totalorder %s1072_s22, %s785_s8  ;;  %s869_s12 = smov [#allocation4]  }
 0x13d   : > { %s789_s14 = sshll.u32 %s869_s12, 4  ;;  %s790_s14 = int_to_ptr.vmem [resolvable:$false] %s789_s14 }
 0x13e   : > { %p787_p1 = pnand %p786_p0, %p935_p4  ;;  %s791_s10 = scalar_lea.vmem %s790_s14, 32 }
 0x13f   : > { %p792_p3 = scmp.lt.s32.totalorder %s1072_s22, %s790_s14  ;;  %p793_p5 = scmp.lt.s32.totalorder %s791_s10, %s785_s8 }
 0x140   : > { %p788_p2 = pneg %p787_p1 }
 0x141   : > { %p794_p6 = por %p793_p5, %p792_p3 }
 0x143   : > { %p795_p7 = pnand %p794_p6, %p788_p2 }
 0x145   : > { %798 = shalt.err (!%p795_p7)
}
 0x146   : > { %s799_s11 = scalar_lea.hbm %s1070_s5, 16  ;;  %s803_s29 = scalar_lea.hbm %s1143_s4, 32 }
 0x147   : > { %p800_p9 = scmp.ne.s32.totalorder %s1070_s5, %s799_s11  ;;  %p804_p12 = scmp.lt.s32.totalorder %s1070_s5, %s1143_s4 }
 0x148   : > { %p805_p13 = scmp.lt.s32.totalorder %s803_s29, %s799_s11 }
 0x149   : > { %p801_p10 = pnand %p800_p9, %p935_p4 }
 0x14a   : > { %p806_p0 = por %p805_p13, %p804_p12 }
 0x14b   : > { %p802_p11 = pneg %p801_p10 }
 0x14d   : > { %p807_p1 = pnand %p806_p0, %p802_p11 }
 0x14f   : > { %810 = shalt.err (!%p807_p1)
}
 0x150   : > { %699 = dma.vmem_to_hbm [thread:$0]  (%p935_p4), %s1072_s22, 16, %s1070_s5, %s463_s7  }
 0x151 PF: > { %p709_p2 = scmp.ge.s32.totalorder %s865_s20, 2  ;;  %s502_s24 = sand.u32 1, %s845_s15  }
 0x152   : > { %s503_s26 = scalar_lea.sflag [#allocation3], %s502_s24 }
 0x153   : > { %p703_p3 = pnand %p709_p2, %p942_p8 }
 0x155   : > { %p704_p5 = pneg %p703_p3 }
 0x157   : > { %836 = dma.done.wait (%p704_p5), %s503_s26, 16  }
 0x158   : > { %838 = vsyncadd (%p704_p5), %s503_s26, 4294967280  ;;  %s511_s18 = scalar_lea.sflag [#allocation5], %s502_s24 }
 0x159   : > { %840 = dma.done.wait (%p704_p5), %s511_s18, 16  }
 0x15a   : > { %842 = vsyncadd (%p704_p5), %s511_s18, 4294967280  ;;  %s21_s20 = sadd.s32 1, %s865_s20   ;;  %s1146_s15 = smov %s849_s16 }
 0x15b   : > { %p18_p6 = scmp.ge.s32.totalorder %s21_s20, 4   ;;  %s1147_s16 = smov %s853_s17 }
 0x15c   : > { %s1148_s17 = smov %s948_s28  ;;  %s1149_s18 = smov %s861_s19 }
 0x15d   : > { %s1150_s19 = smov %s1152_s23  ;;  %20 = sbr.rel (!%p18_p6) target bundleno = 6 (0x6), region = 94 }
 0x162   :  { %515 = vsyncpa [#allocation3], 1 }
 0x163   :  { %517 = vsyncpa [#allocation3 + $0x1], 1 }
 0x164   :  { %518 = vsyncpa [#allocation5], 1 }
 0x165   :  { %520 = vsyncpa [#allocation5 + $0x1], 1 }

</bundles_post_ra>
